<compile_context>
chip_gen: v7x
topology: tpu7x:2x2x1
jax: 0.10.0
libtpu: 0.0.40
codegen_flags: <defaults>
</compile_context>

<pallas_src>
import jax
import jax.numpy as jnp
from jax.experimental import pallas as pl
from jax.experimental.pallas import tpu as pltpu

_VMEM_LIMIT = 32 * 1024 * 1024  # explicit: above v5e's 16 MiB default, safe on v6e/v7x


# ---------------------------------------------------------------------------
# tiling / grouping heuristics
# ---------------------------------------------------------------------------
def _pick_row_tile(rows, cap):
    """Largest multiple of 128 that divides `rows` and is <= cap (None if none)."""
    best = None
    t = 128
    limit = min(rows, cap)
    while t <= limit:
        if rows % t == 0:
            best = t
        t += 128
    return best


def _pick_group(B, R, cap_rows, min_rows=512, min_steps=8):
    """Number of whole batches per grid step for the fused path.

    Prefers >= min_steps grid steps (v7x megacore: 2 TCs need enough parallel work)
    while keeping >= min_rows rows per step; otherwise takes the largest feasible
    group (fewest steps, longest contiguous DMA segments). G always divides B.
    """
    divisors = [g for g in range(1, B + 1) if B % g == 0]
    feasible = [g for g in divisors if g * R <= cap_rows]
    if not feasible:
        return None
    good = [g for g in feasible if (B // g) >= min_steps and g * R >= min_rows]
    if good:
        return max(good)
    return max(feasible)


# ---------------------------------------------------------------------------
# fused path: one grid step handles G batches, duplication via two static stores
# ---------------------------------------------------------------------------
def _fused_grouped_dup_transpose(y, B, R, G, M):
    """y: (B*R, 200) single copy of the data.  Output: (200, M) with M = 2*B*R."""
    dtype = y.dtype
    steps = B // G
    rows = G * R  # rows per step

    def kernel(x_ref, o_ref):
        t = x_ref[...].T                      # (200, G*R): one XLU transpose per step
        for g in range(G):                    # static unroll; offsets are 128-aligned
            sl = t[:, g * R:(g + 1) * R]
            o_ref[:, (2 * g) * R:(2 * g + 1) * R] = sl
            o_ref[:, (2 * g + 1) * R:(2 * g + 2) * R] = sl

    bytes_accessed = 3 * B * R * 200 * dtype.itemsize  # read N once, write 2N once
    return pl.pallas_call(
        kernel,
        out_shape=jax.ShapeDtypeStruct((200, M), dtype),
        grid_spec=pltpu.PrefetchScalarGridSpec(
            num_scalar_prefetch=0,
            grid=(steps,),
            in_specs=[pl.BlockSpec((rows, 200), lambda i: (i, 0))],
            out_specs=pl.BlockSpec((200, 2 * rows), lambda i: (0, i)),
        ),
        compiler_params=pltpu.CompilerParams(
            dimension_semantics=("parallel",),
            vmem_limit_bytes=_VMEM_LIMIT),
        cost_estimate=pl.CostEstimate(flops=0, transcendentals=0,
                                      bytes_accessed=bytes_accessed),
    )(y)


# ---------------------------------------------------------------------------
# tiled path: R too big for one step -> (row-tile, copy) grid, transpose cached
# in scratch so the c==1 step does not redo XLU work
# ---------------------------------------------------------------------------
def _tiled_dup_transpose(y, B, R, tm, M):
    dtype = y.dtype
    rb = R // tm

    def kernel(x_ref, o_ref, t_ref):
        @pl.when(pl.program_id(1) == 0)
        def _():
            t_ref[...] = x_ref[...].T         # only the first copy pays the transpose
        o_ref[...] = t_ref[...]

    def in_map(i, c):
        # Same input block for both copies c=0,1 -> second fetch elided by the pipeline.
        return (i, 0)

    def out_map(i, c):
        b = i // rb
        j = i % rb
        return (0, b * (2 * rb) + c * rb + j)

    bytes_accessed = 3 * B * R * 200 * dtype.itemsize
    return pl.pallas_call(
        kernel,
        out_shape=jax.ShapeDtypeStruct((200, M), dtype),
        grid_spec=pltpu.PrefetchScalarGridSpec(
            num_scalar_prefetch=0,
            grid=(B * rb, 2),
            in_specs=[pl.BlockSpec((tm, 200), in_map)],
            out_specs=pl.BlockSpec((200, tm), out_map),
            scratch_shapes=[pltpu.VMEM((200, tm), dtype)],
        ),
        compiler_params=pltpu.CompilerParams(
            dimension_semantics=("parallel", "arbitrary"),
            vmem_limit_bytes=_VMEM_LIMIT),
        cost_estimate=pl.CostEstimate(flops=0, transcendentals=0,
                                      bytes_accessed=bytes_accessed),
    )(y)


# ---------------------------------------------------------------------------
# fallback: plain transpose of an already materialized (M, 200) matrix
# ---------------------------------------------------------------------------
def _plain_transpose(y, tm_max=2048):
    rows, cols = y.shape
    tm = min(tm_max, max(128, ((rows + 127) // 128) * 128))   # multiple of 128

    def kernel(x_ref, o_ref):
        o_ref[...] = x_ref[...].T

    bytes_accessed = 2 * rows * cols * y.dtype.itemsize
    return pl.pallas_call(
        kernel,
        out_shape=jax.ShapeDtypeStruct((cols, rows), y.dtype),
        grid_spec=pltpu.PrefetchScalarGridSpec(
            num_scalar_prefetch=0,
            grid=(pl.cdiv(rows, tm),),
            in_specs=[pl.BlockSpec((tm, cols), lambda i: (i, 0))],
            out_specs=pl.BlockSpec((cols, tm), lambda i: (0, i)),
        ),
        compiler_params=pltpu.CompilerParams(
            dimension_semantics=("parallel",),
            vmem_limit_bytes=_VMEM_LIMIT),
        cost_estimate=pl.CostEstimate(flops=0, transcendentals=0,
                                      bytes_accessed=bytes_accessed),
    )(y)


# ---------------------------------------------------------------------------
# public entry point: cat([x, x], dim=1).view(-1, 200).transpose(0, 1)
# ---------------------------------------------------------------------------
def cat_view_transpose(x, *, cap_rows=4096):
    """Returns the (200, M) transposed view of cat([x, x], dim=1).view(-1, 200)."""
    B, C, H, W = x.shape
    n_per_batch = C * H * W
    total = 2 * B * n_per_batch
    assert total % 200 == 0, "cat([x, x], dim=1) element count must be divisible by 200"
    M = total // 200
    cap_rows = max(128, cap_rows)   # keep double-buffered in+out tiles <= ~20 MB (v7x safe)

    if n_per_batch % 200 == 0:
        R = n_per_batch // 200       # rows of the (M, 200) view per copy per batch
        if R % 128 == 0:
            y = x.reshape(B * R, 200)     # no concat materialized: read x exactly once
            if R <= cap_rows:
                G = _pick_group(B, R, cap_rows)
                if G is not None:
                    return _fused_grouped_dup_transpose(y, B, R, G, M)
            tm = _pick_row_tile(R, cap_rows)
            if tm is not None:
                return _tiled_dup_transpose(y, B, R, tm, M)

    # Unaligned case: duplicated halves straddle 200-wide row boundaries.
    # TODO(synk): avoid materializing the concat here (extra HBM round trip).
    y = jnp.concatenate([x, x], axis=1).reshape(M, 200)
    return _plain_transpose(y)


if __name__ == "__main__":
    key = jax.random.PRNGKey(0)
    k1, k2, k3 = jax.random.split(key, 3)

    # 1) fused grouped path (R = 128, G = 2 -> single wide step)
    B, C, H, W = 2, 100, 16, 16
    x1 = jax.random.normal(k1, (B, C, H, W), dtype=jnp.float32)
    out1 = jax.block_until_ready(cat_view_transpose(x1))
    ref1 = jnp.concatenate([x1, x1], axis=1).reshape(-1, 200).T
    assert out1.shape == ref1.shape == (200, 2 * B * C * H * W // 200)
    assert jnp.allclose(out1, ref1)

    # 2) tiled path (force R > cap_rows so the scratch + pl.when variant runs)
    x2 = jax.random.normal(k2, (1, 200, 16, 16), dtype=jnp.float32)   # R = 256
    out2 = jax.block_until_ready(cat_view_transpose(x2, cap_rows=128))
    ref2 = jnp.concatenate([x2, x2], axis=1).reshape(-1, 200).T
    assert out2.shape == ref2.shape
    assert jnp.allclose(out2, ref2)

    # 3) unaligned fallback (n_per_batch % 200 != 0)
    x3 = jax.random.normal(k3, (2, 13, 10, 10), dtype=jnp.float32)    # M = 26
    out3 = jax.block_until_ready(cat_view_transpose(x3))
    ref3 = jnp.concatenate([x3, x3], axis=1).reshape(-1, 200).T
    assert out3.shape == ref3.shape
    assert jnp.allclose(out3, ref3)

    print("KERNEL_OK")
</pallas_src>

<mosaic_0001>
module attributes {stable_mosaic.version = 11 : i64} {
  func.func @kernel(%arg0: i32, %arg1: memref<256x200xf32, #tpu.memory_space<vmem>>, %arg2: memref<200x512xf32, #tpu.memory_space<vmem>>) attributes {dimension_semantics = [#tpu.dimension_semantics<parallel>], iteration_bounds = array<i64: 1>, scalar_prefetch = 0 : i64, scratch_operands = 0 : i64, tpu.core_type = #tpu.core_type<tc>, window_params = [{transform_indices = @transform_0, window_bounds = array<i64: 256, 200>}, {transform_indices = @transform_1, window_bounds = array<i64: 200, 512>}]} {
    %c0 = arith.constant 0 : index
    %c0_0 = arith.constant 0 : index
    %0 = vector.load %arg1[%c0, %c0_0] : memref<256x200xf32, #tpu.memory_space<vmem>>, vector<256x200xf32>
    %1 = tpu.transpose %0, [1, 0] : vector<256x200xf32> -> vector<200x256xf32>
    %2 = vector.extract_strided_slice %1 {offsets = [0, 0], sizes = [200, 128], strides = [1, 1]} : vector<200x256xf32> to vector<200x128xf32>
    %c0_1 = arith.constant 0 : index
    %c0_2 = arith.constant 0 : index
    %3 = vector.load %arg2[%c0_1, %c0_2] : memref<200x512xf32, #tpu.memory_space<vmem>>, vector<200x128xf32>
    tpu.vector_store %arg2[%c0_1, %c0_2], %2 {strides = array<i32>} : memref<200x512xf32, #tpu.memory_space<vmem>>, vector<200x128xf32>,
    %c0_3 = arith.constant 0 : index
    %c128 = arith.constant 128 : index
    %4 = vector.load %arg2[%c0_3, %c128] : memref<200x512xf32, #tpu.memory_space<vmem>>, vector<200x128xf32>
    tpu.vector_store %arg2[%c0_3, %c128], %2 {strides = array<i32>} : memref<200x512xf32, #tpu.memory_space<vmem>>, vector<200x128xf32>,
    %5 = vector.extract_strided_slice %1 {offsets = [0, 128], sizes = [200, 128], strides = [1, 1]} : vector<200x256xf32> to vector<200x128xf32>
    %c0_4 = arith.constant 0 : index
    %c256 = arith.constant 256 : index
    %6 = vector.load %arg2[%c0_4, %c256] : memref<200x512xf32, #tpu.memory_space<vmem>>, vector<200x128xf32>
    tpu.vector_store %arg2[%c0_4, %c256], %5 {strides = array<i32>} : memref<200x512xf32, #tpu.memory_space<vmem>>, vector<200x128xf32>,
    %c0_5 = arith.constant 0 : index
    %c384 = arith.constant 384 : index
    %7 = vector.load %arg2[%c0_5, %c384] : memref<200x512xf32, #tpu.memory_space<vmem>>, vector<200x128xf32>
    tpu.vector_store %arg2[%c0_5, %c384], %5 {strides = array<i32>} : memref<200x512xf32, #tpu.memory_space<vmem>>, vector<200x128xf32>,
    return
  }
  func.func @transform_0(%arg0: i32) -> (i32, i32) {
    %c0_i32 = arith.constant 0 : i32
    %c0_i32_0 = arith.constant 0 : i32
    return %arg0, %c0_i32 : i32, i32
  }
  func.func @transform_1(%arg0: i32) -> (i32, i32) {
    %c0_i32 = arith.constant 0 : i32
    %c0_i32_0 = arith.constant 0 : i32
    return %c0_i32, %arg0 : i32, i32
  }
}

</mosaic_0001>

<bundles_post_ra>
// kernel: tpu_custom_call.1
= control target key start
LH: loop header
LB: loop body
LE: loop exit
PB: predicated region body
PF: predicated region fallthrough
CT: control target
= control target key end

     0   :  { %s561_s0 = inlined_call_operand.vmem [shape: f32[256,200], index: 0, kind: input, shape index: {}]   ;;  %s562_s1 = inlined_call_operand.hbm [shape: f32[200,512], index: 1, kind: output, shape index: {}]  }
   0x1   :  { %v9_v0 = vld [vmem:[%s561_s0] sm:$0xff]  ;;  %v11_v1 = vld [vmem:[%s561_s0 + $0x10] sm:$0xff]  ;;  %v10_v2 = vld [vmem:[%s561_s0 + $0x8] sm:$0xff] }
   0x2   :  { %73 = vxpose.xlu0.b32.start [1/16] %v9_v0, 128  ;;  %105 = vxpose.xlu1.b32.start [1/16] (narrow) %v10_v2, 72  ;;  %v12_v3 = vld [vmem:[%s561_s0 + $0x18] sm:$0xff]  ;;  %v13_v4 = vld [vmem:[%s561_s0 + $0x20] sm:$0xff]  ;;  %v14_v5 = vld [vmem:[%s561_s0 + $0x28] sm:$0xff] }
   0x3   :  { %v15_v6 = vld [vmem:[%s561_s0 + $0x30] sm:$0xff]  ;;  %v16_v7 = vld [vmem:[%s561_s0 + $0x38] sm:$0xff]  ;;  %v17_v8 = vld [vmem:[%s561_s0 + $0x40] sm:$0xff] }
   0x4   :  { %v18_v9 = vld [vmem:[%s561_s0 + $0x48] sm:$0xff]  ;;  %v19_v10 = vld [vmem:[%s561_s0 + $0x50] sm:$0xff]  ;;  %v20_v11 = vld [vmem:[%s561_s0 + $0x58] sm:$0xff] }
   0x6   :  { %74 = vxpose.xlu0.b32.cont [2/16] %v11_v1, 128  ;;  %106 = vxpose.xlu1.b32.cont [2/16] (narrow) %v12_v3, 72 }
   0xa   :  { %75 = vxpose.xlu0.b32.cont [3/16] %v13_v4, 128  ;;  %107 = vxpose.xlu1.b32.cont [3/16] (narrow) %v14_v5, 72 }
   0xe   :  { %76 = vxpose.xlu0.b32.cont [4/16] %v15_v6, 128  ;;  %108 = vxpose.xlu1.b32.cont [4/16] (narrow) %v16_v7, 72 }
  0x12   :  { %77 = vxpose.xlu0.b32.cont [5/16] %v17_v8, 128  ;;  %109 = vxpose.xlu1.b32.cont [5/16] (narrow) %v18_v9, 72 }
  0x16   :  { %78 = vxpose.xlu0.b32.cont [6/16] %v19_v10, 128 }
  0x17   :  { %6 = vsyncpa [#allocation3], 0  ;;  %v21_v12 = vld [vmem:[%s561_s0 + $0x60] sm:$0xff]  ;;  %110 = vxpose.xlu1.b32.cont [6/16] (narrow) %v20_v11, 72  ;;  %v22_v13 = vld [vmem:[%s561_s0 + $0x68] sm:$0xff] }
  0x18   :  { %v23_v14 = vld [vmem:[%s561_s0 + $0x70] sm:$0xff]  ;;  %v24_v15 = vld [vmem:[%s561_s0 + $0x78] sm:$0xff]  ;;  %v25_v16 = vld [vmem:[%s561_s0 + $0x80] sm:$0xff] }
  0x19   :  { %v26_v17 = vld [vmem:[%s561_s0 + $0x88] sm:$0xff]  ;;  %v27_v18 = vld [vmem:[%s561_s0 + $0x90] sm:$0xff]  ;;  %v28_v19 = vld [vmem:[%s561_s0 + $0x98] sm:$0xff] }
  0x1a   :  { %79 = vxpose.xlu0.b32.cont [7/16] %v21_v12, 128  ;;  %v29_v20 = vld [vmem:[%s561_s0 + $0xa0] sm:$0xff]  ;;  %v30_v21 = vld [vmem:[%s561_s0 + $0xa8] sm:$0xff]  ;;  %v31_v22 = vld [vmem:[%s561_s0 + $0xb0] sm:$0xff] }
  0x1b   :  { %111 = vxpose.xlu1.b32.cont [7/16] (narrow) %v22_v13, 72  ;;  %v32_v23 = vld [vmem:[%s561_s0 + $0xb8] sm:$0xff]  ;;  %v33_v24 = vld [vmem:[%s561_s0 + $0xc0] sm:$0xff]  ;;  %v34_v25 = vld [vmem:[%s561_s0 + $0xc8] sm:$0xff] }
  0x1c   :  { %v35_v26 = vld [vmem:[%s561_s0 + $0xd0] sm:$0xff]  ;;  %v36_v27 = vld [vmem:[%s561_s0 + $0xd8] sm:$0xff]  ;;  %v37_v28 = vld [vmem:[%s561_s0 + $0xe0] sm:$0xff] }
  0x1d   :  { %v38_v29 = vld [vmem:[%s561_s0 + $0xe8] sm:$0xff]  ;;  %v39_v30 = vld [vmem:[%s561_s0 + $0xf0] sm:$0xff]  ;;  %v40_v31 = vld [vmem:[%s561_s0 + $0xf8] sm:$0xff] }
  0x1e   :  { %80 = vxpose.xlu0.b32.cont [8/16] %v23_v14, 128  ;;  %v41_v32 = vld [vmem:[%s561_s0 + $0x100] sm:$0xff]  ;;  %v42_v33 = vld [vmem:[%s561_s0 + $0x108] sm:$0xff]  ;;  %v43_v34 = vld [vmem:[%s561_s0 + $0x110] sm:$0xff] }
  0x1f   :  { %112 = vxpose.xlu1.b32.cont [8/16] (narrow) %v24_v15, 72  ;;  %v44_v35 = vld [vmem:[%s561_s0 + $0x118] sm:$0xff]  ;;  %v45_v36 = vld [vmem:[%s561_s0 + $0x120] sm:$0xff]  ;;  %v46_v37 = vld [vmem:[%s561_s0 + $0x128] sm:$0xff] }
  0x20   :  { %v47_v38 = vld [vmem:[%s561_s0 + $0x130] sm:$0xff]  ;;  %v48_v39 = vld [vmem:[%s561_s0 + $0x138] sm:$0xff]  ;;  %v49_v40 = vld [vmem:[%s561_s0 + $0x140] sm:$0xff] }
  0x21   :  { %v50_v41 = vld [vmem:[%s561_s0 + $0x148] sm:$0xff]  ;;  %v51_v42 = vld [vmem:[%s561_s0 + $0x150] sm:$0xff]  ;;  %v52_v43 = vld [vmem:[%s561_s0 + $0x158] sm:$0xff] }
  0x22   :  { %81 = vxpose.xlu0.b32.cont [9/16] %v25_v16, 128  ;;  %v53_v44 = vld [vmem:[%s561_s0 + $0x160] sm:$0xff]  ;;  %v54_v45 = vld [vmem:[%s561_s0 + $0x168] sm:$0xff]  ;;  %v55_v46 = vld [vmem:[%s561_s0 + $0x170] sm:$0xff] }
  0x23   :  { %113 = vxpose.xlu1.b32.cont [9/16] (narrow) %v26_v17, 72  ;;  %v56_v47 = vld [vmem:[%s561_s0 + $0x178] sm:$0xff]  ;;  %v57_v48 = vld [vmem:[%s561_s0 + $0x180] sm:$0xff]  ;;  %v58_v49 = vld [vmem:[%s561_s0 + $0x188] sm:$0xff] }
  0x24   :  { %v59_v50 = vld [vmem:[%s561_s0 + $0x190] sm:$0xff]  ;;  %v60_v51 = vld [vmem:[%s561_s0 + $0x198] sm:$0xff]  ;;  %v61_v52 = vld [vmem:[%s561_s0 + $0x1a0] sm:$0xff] }
  0x25   :  { %v62_v53 = vld [vmem:[%s561_s0 + $0x1a8] sm:$0xff]  ;;  %v63_v54 = vld [vmem:[%s561_s0 + $0x1b0] sm:$0xff]  ;;  %v64_v55 = vld [vmem:[%s561_s0 + $0x1b8] sm:$0xff] }
  0x26   :  { %82 = vxpose.xlu0.b32.cont [10/16] %v27_v18, 128  ;;  %v65_v56 = vld [vmem:[%s561_s0 + $0x1c0] sm:$0xff]  ;;  %v66_v57 = vld [vmem:[%s561_s0 + $0x1c8] sm:$0xff]  ;;  %v67_v58 = vld [vmem:[%s561_s0 + $0x1d0] sm:$0xff] }
  0x27   :  { %114 = vxpose.xlu1.b32.cont [10/16] (narrow) %v28_v19, 72  ;;  %v68_v59 = vld [vmem:[%s561_s0 + $0x1d8] sm:$0xff]  ;;  %v69_v60 = vld [vmem:[%s561_s0 + $0x1e0] sm:$0xff]  ;;  %v70_v61 = vld [vmem:[%s561_s0 + $0x1e8] sm:$0xff] }
  0x28   :  { %v71_v62 = vld [vmem:[%s561_s0 + $0x1f0] sm:$0xff]  ;;  %v72_v63 = vld [vmem:[%s561_s0 + $0x1f8] sm:$0xff]  ;;  %s344_s0 = smov [#allocation2]  }
  0x29   :  { %s306_s18 = sshll.u32 %s344_s0, 4  ;;  %s307_s18 = int_to_ptr.vmem [resolvable:$true] %s306_s18 }
  0x2a   :  { %83 = vxpose.xlu0.b32.cont [11/16] %v29_v20, 128  ;;  %s320_s19 = scalar_lea.vmem %s307_s18, 12800  ;;  %p325_p1 = scmp.lt.s32.totalorder %s307_s18, %s307_s18 }
  0x2b   :  { %115 = vxpose.xlu1.b32.cont [11/16] (narrow) %v30_v21, 72  ;;  %p321_p0 = scmp.ne.s32.totalorder %s307_s18, %s320_s19  ;;  %p326_p2 = scmp.lt.s32.totalorder %s320_s19, %s320_s19 }
  0x2d   :  { %p327_p3 = por %p326_p2, %p325_p1 }
  0x2e   :  { %84 = vxpose.xlu0.b32.cont [12/16] %v31_v22, 128 }
  0x2f   :  { %116 = vxpose.xlu1.b32.cont [12/16] (narrow) %v32_v23, 72  ;;  %p328_p4 = pnand %p327_p3, %p321_p0 }
  0x32   :  { %85 = vxpose.xlu0.b32.cont [13/16] %v33_v24, 128 }
  0x33   :  { %117 = vxpose.xlu1.b32.cont [13/16] (narrow) %v34_v25, 72 }
  0x36   :  { %86 = vxpose.xlu0.b32.cont [14/16] %v35_v26, 128 }
  0x37   :  { %118 = vxpose.xlu1.b32.cont [14/16] (narrow) %v36_v27, 72 }
  0x3a   :  { %87 = vxpose.xlu0.b32.cont [15/16] %v37_v28, 128 }
  0x3b   :  { %119 = vxpose.xlu1.b32.cont [15/16] (narrow) %v38_v29, 72 }
  0x3e   :  { %88 = vxpose.xlu0.b32.end [16/16] %v39_v30, 128 }
  0x3f   :  { %120 = vxpose.xlu1.b32.end [16/16] (narrow) %v40_v31, 72 }
  0x42   :  { %137 = vxpose.xlu0.b32.start [1/16] %v41_v32, 128 }
  0x43   :  { %169 = vxpose.xlu1.b32.start [1/16] (narrow) %v42_v33, 72 }
  0x46   :  { %138 = vxpose.xlu0.b32.cont [2/16] %v43_v34, 128 }
  0x47   :  { %170 = vxpose.xlu1.b32.cont [2/16] (narrow) %v44_v35, 72 }
  0x4a   :  { %139 = vxpose.xlu0.b32.cont [3/16] %v45_v36, 128 }
  0x4b   :  { %171 = vxpose.xlu1.b32.cont [3/16] (narrow) %v46_v37, 72 }
  0x4e   :  { %140 = vxpose.xlu0.b32.cont [4/16] %v47_v38, 128 }
  0x4f   :  { %172 = vxpose.xlu1.b32.cont [4/16] (narrow) %v48_v39, 72 }
  0x52   :  { %141 = vxpose.xlu0.b32.cont [5/16] %v49_v40, 128 }
  0x53   :  { %173 = vxpose.xlu1.b32.cont [5/16] (narrow) %v50_v41, 72 }
  0x56   :  { %142 = vxpose.xlu0.b32.cont [6/16] %v51_v42, 128 }
  0x57   :  { %174 = vxpose.xlu1.b32.cont [6/16] (narrow) %v52_v43, 72 }
  0x5a   :  { %143 = vxpose.xlu0.b32.cont [7/16] %v53_v44, 128 }
  0x5b   :  { %175 = vxpose.xlu1.b32.cont [7/16] (narrow) %v54_v45, 72 }
  0x5e   :  { %144 = vxpose.xlu0.b32.cont [8/16] %v55_v46, 128 }
  0x5f   :  { %176 = vxpose.xlu1.b32.cont [8/16] (narrow) %v56_v47, 72 }
  0x62   :  { %145 = vxpose.xlu0.b32.cont [9/16] %v57_v48, 128 }
  0x63   :  { %177 = vxpose.xlu1.b32.cont [9/16] (narrow) %v58_v49, 72 }
  0x66   :  { %146 = vxpose.xlu0.b32.cont [10/16] %v59_v50, 128 }
  0x67   :  { %178 = vxpose.xlu1.b32.cont [10/16] (narrow) %v60_v51, 72 }
  0x6a   :  { %147 = vxpose.xlu0.b32.cont [11/16] %v61_v52, 128 }
  0x6b   :  { %179 = vxpose.xlu1.b32.cont [11/16] (narrow) %v62_v53, 72 }
  0x6e   :  { %148 = vxpose.xlu0.b32.cont [12/16] %v63_v54, 128 }
  0x6f   :  { %180 = vxpose.xlu1.b32.cont [12/16] (narrow) %v64_v55, 72 }
  0x72   :  { %149 = vxpose.xlu0.b32.cont [13/16] %v65_v56, 128 }
  0x73   :  { %181 = vxpose.xlu1.b32.cont [13/16] (narrow) %v66_v57, 72 }
  0x76   :  { %150 = vxpose.xlu0.b32.cont [14/16] %v67_v58, 128 }
  0x77   :  { %182 = vxpose.xlu1.b32.cont [14/16] (narrow) %v68_v59, 72 }
  0x7a   :  { %151 = vxpose.xlu0.b32.cont [15/16] %v69_v60, 128 }
  0x7b   :  { %183 = vxpose.xlu1.b32.cont [15/16] (narrow) %v70_v61, 72 }
  0x7e   :  { %152 = vxpose.xlu0.b32.end [16/16] %v71_v62, 128 }
  0x7f   :  { %184 = vxpose.xlu1.b32.end [16/16] (narrow) %v72_v63, 72 }
  0x82   :  { %v89_v0 = vpop.trf.xlu0 }
  0x83   :  { %201 = vst [vmem:[#allocation2] sm:$0xff] %v89_v0  ;;  %226 = vst [vmem:[#allocation2 + $0x8] sm:$0xff] %v89_v0  ;;  %v121_v1 = vpop.trf.xlu1 }
  0x84   :  { %217 = vst [vmem:[#allocation2 + $0x200] sm:$0xff] %v121_v1  ;;  %242 = vst [vmem:[#allocation2 + $0x208] sm:$0xff] %v121_v1 }
  0x86   :  { %v90_v2 = vpop.trf.xlu0 }
  0x87   :  { %202 = vst [vmem:[#allocation2 + $0x20] sm:$0xff] %v90_v2  ;;  %227 = vst [vmem:[#allocation2 + $0x28] sm:$0xff] %v90_v2  ;;  %v122_v3 = vpop.trf.xlu1 }
  0x88   :  { %218 = vst [vmem:[#allocation2 + $0x220] sm:$0xff] %v122_v3  ;;  %243 = vst [vmem:[#allocation2 + $0x228] sm:$0xff] %v122_v3 }
  0x8a   :  { %v91_v4 = vpop.trf.xlu0 }
  0x8b   :  { %203 = vst [vmem:[#allocation2 + $0x40] sm:$0xff] %v91_v4  ;;  %228 = vst [vmem:[#allocation2 + $0x48] sm:$0xff] %v91_v4  ;;  %v123_v5 = vpop.trf.xlu1 }
  0x8c   :  { %219 = vst [vmem:[#allocation2 + $0x240] sm:$0xff] %v123_v5  ;;  %244 = vst [vmem:[#allocation2 + $0x248] sm:$0xff] %v123_v5 }
  0x8e   :  { %v92_v6 = vpop.trf.xlu0 }
  0x8f   :  { %204 = vst [vmem:[#allocation2 + $0x60] sm:$0xff] %v92_v6  ;;  %229 = vst [vmem:[#allocation2 + $0x68] sm:$0xff] %v92_v6  ;;  %v124_v7 = vpop.trf.xlu1 }
  0x90   :  { %220 = vst [vmem:[#allocation2 + $0x260] sm:$0xff] %v124_v7  ;;  %245 = vst [vmem:[#allocation2 + $0x268] sm:$0xff] %v124_v7 }
  0x92   :  { %v93_v8 = vpop.trf.xlu0 }
  0x93   :  { %205 = vst [vmem:[#allocation2 + $0x80] sm:$0xff] %v93_v8  ;;  %230 = vst [vmem:[#allocation2 + $0x88] sm:$0xff] %v93_v8  ;;  %v125_v9 = vpop.trf.xlu1 }
  0x94   :  { %221 = vst [vmem:[#allocation2 + $0x280] sm:$0xff] %v125_v9  ;;  %246 = vst [vmem:[#allocation2 + $0x288] sm:$0xff] %v125_v9 }
  0x96   :  { %v94_v10 = vpop.trf.xlu0 }
  0x97   :  { %206 = vst [vmem:[#allocation2 + $0xa0] sm:$0xff] %v94_v10  ;;  %231 = vst [vmem:[#allocation2 + $0xa8] sm:$0xff] %v94_v10  ;;  %v126_v11 = vpop.trf.xlu1 }
  0x98   :  { %222 = vst [vmem:[#allocation2 + $0x2a0] sm:$0xff] %v126_v11  ;;  %247 = vst [vmem:[#allocation2 + $0x2a8] sm:$0xff] %v126_v11 }
  0x9a   :  { %v95_v12 = vpop.trf.xlu0 }
  0x9b   :  { %207 = vst [vmem:[#allocation2 + $0xc0] sm:$0xff] %v95_v12  ;;  %232 = vst [vmem:[#allocation2 + $0xc8] sm:$0xff] %v95_v12  ;;  %v127_v13 = vpop.trf.xlu1 }
  0x9c   :  { %223 = vst [vmem:[#allocation2 + $0x2c0] sm:$0xff] %v127_v13  ;;  %248 = vst [vmem:[#allocation2 + $0x2c8] sm:$0xff] %v127_v13 }
  0x9e   :  { %v96_v14 = vpop.trf.xlu0 }
  0x9f   :  { %208 = vst [vmem:[#allocation2 + $0xe0] sm:$0xff] %v96_v14  ;;  %233 = vst [vmem:[#allocation2 + $0xe8] sm:$0xff] %v96_v14  ;;  %v128_v15 = vpop.trf.xlu1 }
  0xa0   :  { %224 = vst [vmem:[#allocation2 + $0x2e0] sm:$0xff] %v128_v15  ;;  %249 = vst [vmem:[#allocation2 + $0x2e8] sm:$0xff] %v128_v15 }
  0xa2   :  { %v97_v16 = vpop.trf.xlu0 }
  0xa3   :  { %209 = vst [vmem:[#allocation2 + $0x100] sm:$0xff] %v97_v16  ;;  %234 = vst [vmem:[#allocation2 + $0x108] sm:$0xff] %v97_v16  ;;  %v129_v17 = vpop.trf.xlu1 }
  0xa4   :  { %225 = vst [vmem:[#allocation2 + $0x300] sm:$0xff] %v129_v17  ;;  %250 = vst [vmem:[#allocation2 + $0x308] sm:$0xff] %v129_v17 }
  0xa6   :  { %v98_v18 = vpop.trf.xlu0 }
  0xa7   :  { %210 = vst [vmem:[#allocation2 + $0x120] sm:$0xff] %v98_v18  ;;  %235 = vst [vmem:[#allocation2 + $0x128] sm:$0xff] %v98_v18 }
  0xaa   :  { %v99_v19 = vpop.trf.xlu0 }
  0xab   :  { %211 = vst [vmem:[#allocation2 + $0x140] sm:$0xff] %v99_v19  ;;  %236 = vst [vmem:[#allocation2 + $0x148] sm:$0xff] %v99_v19 }
  0xae   :  { %v100_v20 = vpop.trf.xlu0 }
  0xaf   :  { %212 = vst [vmem:[#allocation2 + $0x160] sm:$0xff] %v100_v20  ;;  %237 = vst [vmem:[#allocation2 + $0x168] sm:$0xff] %v100_v20 }
  0xb2   :  { %v101_v21 = vpop.trf.xlu0 }
  0xb3   :  { %213 = vst [vmem:[#allocation2 + $0x180] sm:$0xff] %v101_v21  ;;  %238 = vst [vmem:[#allocation2 + $0x188] sm:$0xff] %v101_v21 }
  0xb6   :  { %v102_v22 = vpop.trf.xlu0 }
  0xb7   :  { %214 = vst [vmem:[#allocation2 + $0x1a0] sm:$0xff] %v102_v22  ;;  %239 = vst [vmem:[#allocation2 + $0x1a8] sm:$0xff] %v102_v22 }
  0xba   :  { %v103_v23 = vpop.trf.xlu0 }
  0xbb   :  { %215 = vst [vmem:[#allocation2 + $0x1c0] sm:$0xff] %v103_v23  ;;  %240 = vst [vmem:[#allocation2 + $0x1c8] sm:$0xff] %v103_v23 }
  0xbe   :  { %v104_v24 = vpop.trf.xlu0 }
  0xbf   :  { %216 = vst [vmem:[#allocation2 + $0x1e0] sm:$0xff] %v104_v24  ;;  %241 = vst [vmem:[#allocation2 + $0x1e8] sm:$0xff] %v104_v24 }
  0xc2   :  { %v153_v25 = vpop.trf.xlu0 }
  0xc3   :  { %251 = vst [vmem:[#allocation2 + $0x10] sm:$0xff] %v153_v25  ;;  %276 = vst [vmem:[#allocation2 + $0x18] sm:$0xff] %v153_v25  ;;  %v185_v26 = vpop.trf.xlu1 }
  0xc4   :  { %267 = vst [vmem:[#allocation2 + $0x210] sm:$0xff] %v185_v26  ;;  %292 = vst [vmem:[#allocation2 + $0x218] sm:$0xff] %v185_v26 }
  0xc6   :  { %v154_v27 = vpop.trf.xlu0 }
  0xc7   :  { %252 = vst [vmem:[#allocation2 + $0x30] sm:$0xff] %v154_v27  ;;  %277 = vst [vmem:[#allocation2 + $0x38] sm:$0xff] %v154_v27  ;;  %v186_v28 = vpop.trf.xlu1 }
  0xc8   :  { %268 = vst [vmem:[#allocation2 + $0x230] sm:$0xff] %v186_v28  ;;  %293 = vst [vmem:[#allocation2 + $0x238] sm:$0xff] %v186_v28 }
  0xca   :  { %v155_v29 = vpop.trf.xlu0 }
  0xcb   :  { %253 = vst [vmem:[#allocation2 + $0x50] sm:$0xff] %v155_v29  ;;  %278 = vst [vmem:[#allocation2 + $0x58] sm:$0xff] %v155_v29  ;;  %v187_v30 = vpop.trf.xlu1 }
  0xcc   :  { %269 = vst [vmem:[#allocation2 + $0x250] sm:$0xff] %v187_v30  ;;  %294 = vst [vmem:[#allocation2 + $0x258] sm:$0xff] %v187_v30 }
  0xce   :  { %v156_v31 = vpop.trf.xlu0 }
  0xcf   :  { %254 = vst [vmem:[#allocation2 + $0x70] sm:$0xff] %v156_v31  ;;  %279 = vst [vmem:[#allocation2 + $0x78] sm:$0xff] %v156_v31  ;;  %v188_v32 = vpop.trf.xlu1 }
  0xd0   :  { %270 = vst [vmem:[#allocation2 + $0x270] sm:$0xff] %v188_v32  ;;  %295 = vst [vmem:[#allocation2 + $0x278] sm:$0xff] %v188_v32 }
  0xd2   :  { %v157_v33 = vpop.trf.xlu0 }
  0xd3   :  { %255 = vst [vmem:[#allocation2 + $0x90] sm:$0xff] %v157_v33  ;;  %280 = vst [vmem:[#allocation2 + $0x98] sm:$0xff] %v157_v33  ;;  %v189_v34 = vpop.trf.xlu1 }
  0xd4   :  { %271 = vst [vmem:[#allocation2 + $0x290] sm:$0xff] %v189_v34  ;;  %296 = vst [vmem:[#allocation2 + $0x298] sm:$0xff] %v189_v34 }
  0xd6   :  { %v158_v35 = vpop.trf.xlu0 }
  0xd7   :  { %256 = vst [vmem:[#allocation2 + $0xb0] sm:$0xff] %v158_v35  ;;  %281 = vst [vmem:[#allocation2 + $0xb8] sm:$0xff] %v158_v35  ;;  %v190_v36 = vpop.trf.xlu1 }
  0xd8   :  { %272 = vst [vmem:[#allocation2 + $0x2b0] sm:$0xff] %v190_v36  ;;  %297 = vst [vmem:[#allocation2 + $0x2b8] sm:$0xff] %v190_v36 }
  0xda   :  { %v159_v37 = vpop.trf.xlu0 }
  0xdb   :  { %257 = vst [vmem:[#allocation2 + $0xd0] sm:$0xff] %v159_v37  ;;  %282 = vst [vmem:[#allocation2 + $0xd8] sm:$0xff] %v159_v37  ;;  %v191_v38 = vpop.trf.xlu1 }
  0xdc   :  { %273 = vst [vmem:[#allocation2 + $0x2d0] sm:$0xff] %v191_v38  ;;  %298 = vst [vmem:[#allocation2 + $0x2d8] sm:$0xff] %v191_v38 }
  0xde   :  { %v160_v39 = vpop.trf.xlu0 }
  0xdf   :  { %258 = vst [vmem:[#allocation2 + $0xf0] sm:$0xff] %v160_v39  ;;  %283 = vst [vmem:[#allocation2 + $0xf8] sm:$0xff] %v160_v39  ;;  %v192_v40 = vpop.trf.xlu1 }
  0xe0   :  { %274 = vst [vmem:[#allocation2 + $0x2f0] sm:$0xff] %v192_v40  ;;  %299 = vst [vmem:[#allocation2 + $0x2f8] sm:$0xff] %v192_v40 }
  0xe2   :  { %v161_v41 = vpop.trf.xlu0 }
  0xe3   :  { %259 = vst [vmem:[#allocation2 + $0x110] sm:$0xff] %v161_v41  ;;  %284 = vst [vmem:[#allocation2 + $0x118] sm:$0xff] %v161_v41  ;;  %v193_v42 = vpop.trf.xlu1 }
  0xe4   :  { %275 = vst [vmem:[#allocation2 + $0x310] sm:$0xff] %v193_v42  ;;  %300 = vst [vmem:[#allocation2 + $0x318] sm:$0xff] %v193_v42 }
  0xe6   :  { %v162_v43 = vpop.trf.xlu0 }
  0xe7   :  { %260 = vst [vmem:[#allocation2 + $0x130] sm:$0xff] %v162_v43  ;;  %285 = vst [vmem:[#allocation2 + $0x138] sm:$0xff] %v162_v43 }
  0xea   :  { %v163_v44 = vpop.trf.xlu0 }
  0xeb   :  { %261 = vst [vmem:[#allocation2 + $0x150] sm:$0xff] %v163_v44  ;;  %286 = vst [vmem:[#allocation2 + $0x158] sm:$0xff] %v163_v44 }
  0xee   :  { %v164_v45 = vpop.trf.xlu0 }
  0xef   :  { %262 = vst [vmem:[#allocation2 + $0x170] sm:$0xff] %v164_v45  ;;  %287 = vst [vmem:[#allocation2 + $0x178] sm:$0xff] %v164_v45 }
  0xf2   :  { %v165_v46 = vpop.trf.xlu0 }
  0xf3   :  { %263 = vst [vmem:[#allocation2 + $0x190] sm:$0xff] %v165_v46  ;;  %288 = vst [vmem:[#allocation2 + $0x198] sm:$0xff] %v165_v46 }
  0xf6   :  { %v166_v47 = vpop.trf.xlu0 }
  0xf7   :  { %264 = vst [vmem:[#allocation2 + $0x1b0] sm:$0xff] %v166_v47  ;;  %289 = vst [vmem:[#allocation2 + $0x1b8] sm:$0xff] %v166_v47 }
  0xfa   :  { %v167_v48 = vpop.trf.xlu0 }
  0xfb   :  { %265 = vst [vmem:[#allocation2 + $0x1d0] sm:$0xff] %v167_v48  ;;  %290 = vst [vmem:[#allocation2 + $0x1d8] sm:$0xff] %v167_v48 }
  0xfe   :  { %v168_v49 = vpop.trf.xlu0 }
  0xff   :  { %266 = vst [vmem:[#allocation2 + $0x1f0] sm:$0xff] %v168_v49  ;;  %291 = vst [vmem:[#allocation2 + $0x1f8] sm:$0xff] %v168_v49 }
 0x100   :  { %331 = shalt.err (!%p328_p4)
}
 0x101   :  { %s332_s22 = scalar_lea.hbm %s562_s1, 12800 }
 0x102   :  { %p333_p5 = scmp.ne.s32.totalorder %s562_s1, %s332_s22  ;;  %p336_p6 = scmp.lt.u32.totalorder %s332_s22, %s562_s1 }
 0x104   :  { %p338_p7 = pnand %p336_p6, %p333_p5 }
 0x106   :  { %341 = shalt.err (!%p338_p7)
}
 0x107   :  { %s345_s27 = smov 512   ;;  %s346_s28 = smov 32  }
 0x108   :  { %312 = dma.vmem_to_hbm [thread:$0]  %s307_s18, 12800, %s562_s1, [#allocation3], %s345_s27, %s345_s27, %s346_s28  }
 0x109   :  { %342 = dma.done.wait [#allocation3], 12800  }
 0x10a   :  { %343 = vsyncadd [#allocation3], 4294954496 }
 0x10b   :  { %316 = vsyncpa [#allocation3], 1 }

</bundles_post_ra>
